<compile_context>
chip_gen: v7x
topology: tpu7x:2x2x1
jax: 0.10.0
libtpu: 0.0.40
codegen_flags: <defaults>
</compile_context>

<pallas_src>
import math
import functools

import jax
import jax.numpy as jnp
from jax.experimental import pallas as pl
from jax.experimental.pallas import tpu as pltpu


# ----------------------------------------------------------------------------
# Tiling helper
# ----------------------------------------------------------------------------
def _tile(dim, target, align):
    """Largest block size t <= target with t % align == 0 and dim % t == 0.

    Falls back to the full dimension (always a legal block) if no aligned
    divisor exists or the dimension already fits the target.
    """
    if dim <= target:
        return dim
    t = (target // align) * align
    while t >= align:
        if dim % t == 0:
            return t
        t -= align
    return dim


# ----------------------------------------------------------------------------
# Linear projection kernels
# ----------------------------------------------------------------------------
def _linear_kernel(x_ref, w_ref, o_ref):
    # Full-K block: single MXU pass, no accumulator scratch needed.
    o_ref[...] = jnp.dot(x_ref[...], w_ref[...],
                         preferred_element_type=jnp.float32).astype(o_ref.dtype)


def _linear_bias_kernel(x_ref, w_ref, b_ref, o_ref):
    acc = jnp.dot(x_ref[...], w_ref[...], preferred_element_type=jnp.float32)
    o_ref[...] = (acc + b_ref[...].astype(jnp.float32)).astype(o_ref.dtype)


def _matmul_acc_kernel(x_ref, w_ref, o_ref, acc_ref):
    # K-tiled fallback (only used when K > tk_max).
    @pl.when(pl.program_id(2) == 0)
    def _init():
        acc_ref[...] = jnp.zeros(acc_ref.shape, acc_ref.dtype)

    acc_ref[...] += jnp.dot(x_ref[...], w_ref[...],
                            preferred_element_type=jnp.float32)

    @pl.when(pl.program_id(2) == pl.num_programs(2) - 1)
    def _finalize():
        o_ref[...] = acc_ref[...].astype(o_ref.dtype)


def _matmul_acc_bias_kernel(x_ref, w_ref, b_ref, o_ref, acc_ref):
    @pl.when(pl.program_id(2) == 0)
    def _init():
        acc_ref[...] = jnp.zeros(acc_ref.shape, acc_ref.dtype)

    acc_ref[...] += jnp.dot(x_ref[...], w_ref[...],
                            preferred_element_type=jnp.float32)

    @pl.when(pl.program_id(2) == pl.num_programs(2) - 1)
    def _finalize():
        o_ref[...] = (acc_ref[...] + b_ref[...].astype(jnp.float32)
                      ).astype(o_ref.dtype)


def pallas_linear(x2d, w, bias=None, *, tm=256, tn=512, tk_max=2048):
    """x2d: (M, K), w: (K, N), bias: (N,) or None -> (M, N)."""
    M, K = x2d.shape
    K2, N = w.shape
    assert K == K2
    bm = _tile(M, tm, 8)
    bn = _tile(N, tn, 128)
    itm = jnp.dtype(x2d.dtype).itemsize

    if K <= tk_max:
        # Resident-K path: grid (M/bm, N/bn); j is the innermost axis so the
        # x block (i, 0) is never re-DMA'd while j sweeps the output columns.
        grid = (M // bm, N // bn)
        in_specs = [pl.BlockSpec((bm, K), lambda i, j: (i, 0)),
                    pl.BlockSpec((K, bn), lambda i, j: (0, j))]
        operands = [x2d, w]
        kernel = _linear_kernel
        if bias is not None:
            in_specs.append(pl.BlockSpec((1, bn), lambda i, j: (0, j)))
            operands.append(bias.reshape(1, N))
            kernel = _linear_bias_kernel
        out_spec = pl.BlockSpec((bm, bn), lambda i, j: (i, j))
        scratch = []
        sem = ("parallel", "parallel")
        est = 2 * (bm * K + K * bn + bn + bm * bn) * itm
    else:
        bk = _tile(K, tk_max, 128)
        grid = (M // bm, N // bn, K // bk)
        in_specs = [pl.BlockSpec((bm, bk), lambda i, j, k: (i, k)),
                    pl.BlockSpec((bk, bn), lambda i, j, k: (k, j))]
        operands = [x2d, w]
        kernel = _matmul_acc_kernel
        if bias is not None:
            in_specs.append(pl.BlockSpec((1, bn), lambda i, j, k: (0, j)))
            operands.append(bias.reshape(1, N))
            kernel = _matmul_acc_bias_kernel
        out_spec = pl.BlockSpec((bm, bn), lambda i, j, k: (i, j))
        scratch = [pltpu.VMEM((bm, bn), jnp.float32)]
        sem = ("parallel", "parallel", "arbitrary")
        est = 2 * (bm * bk + bk * bn + bn + bm * bn) * itm + bm * bn * 4

    # Explicit scoped-VMEM limit: >= 32 MiB (above every default), capped well
    # under v7x's 64 MiB physical per-TC VMEM.
    vmem_limit = int(min(max(2 * est, 32 * 1024 * 1024), 48 * 1024 * 1024))

    return pl.pallas_call(
        kernel,
        out_shape=jax.ShapeDtypeStruct((M, N), x2d.dtype),
        grid_spec=pltpu.PrefetchScalarGridSpec(
            num_scalar_prefetch=0,
            grid=grid,
            in_specs=in_specs,
            out_specs=out_spec,
            scratch_shapes=scratch,
        ),
        compiler_params=pltpu.CompilerParams(
            dimension_semantics=sem,
            vmem_limit_bytes=vmem_limit),
    )(*operands)


# ----------------------------------------------------------------------------
# KV-tiled online-softmax (flash) attention kernel
# ----------------------------------------------------------------------------
def _flash_attn_kernel(q_ref, k_ref, v_ref, o_ref, m_sc, l_sc, acc_sc,
                       *, g, d, kv_axis, exp_bf16, approx_recip):
    """One 128-aligned head-group (g heads of size d) per grid step.

    q/k/v blocks are (1, t, g*d); the softmax scale is pre-folded into the
    q-projection weights, so no per-step scaling here.  Stats / accumulator
    are f32; MXU inputs stay in the source dtype.
    """
    kv = pl.program_id(kv_axis)

    @pl.when(kv == 0)
    def _init():
        m_sc[...] = jnp.full(m_sc.shape, -jnp.inf, m_sc.dtype)
        l_sc[...] = jnp.zeros(l_sc.shape, l_sc.dtype)
        acc_sc[...] = jnp.zeros(acc_sc.shape, acc_sc.dtype)

    # Static unroll over the heads packed into this lane-dense block.
    for i in range(g):
        lo, hi = i * d, (i + 1) * d
        q = q_ref[0, :, lo:hi]                       # (tq, d)
        k = k_ref[0, :, lo:hi]                       # (tk, d)
        # QK^T: contract on d directly (no materialised k.T).
        s = jax.lax.dot_general(
            q, k, dimension_numbers=(((1,), (1,)), ((), ())),
            preferred_element_type=jnp.float32)      # (tq, tk)

        m_prev = m_sc[i]
        m_new = jnp.maximum(m_prev, jnp.max(s, axis=-1, keepdims=True))
        alpha = jnp.exp(m_prev - m_new)
        if exp_bf16:
            # bf16 EUP exp path (bf16 inputs / v6e-v7x); stats stay f32.
            p = jnp.exp((s - m_new).astype(jnp.bfloat16))
            p_sum = jnp.sum(p.astype(jnp.float32), axis=-1, keepdims=True)
            p_mm = p
        else:
            p = jnp.exp(s - m_new)
            p_sum = jnp.sum(p, axis=-1, keepdims=True)
            p_mm = p.astype(v_ref.dtype)
        l_sc[i] = alpha * l_sc[i] + p_sum
        acc_sc[i] = alpha * acc_sc[i] + jnp.dot(
            p_mm, v_ref[0, :, lo:hi], preferred_element_type=jnp.float32)
        m_sc[i] = m_new

    @pl.when(kv == pl.num_programs(kv_axis) - 1)
    def _finalize():
        for i in range(g):
            inv_l = pl.reciprocal(l_sc[i], approx=approx_recip)
            o_ref[0, :, i * d:(i + 1) * d] = (acc_sc[i] * inv_l
                                              ).astype(o_ref.dtype)


def pallas_flash_attention_packed(q_arr, kv_arr, *, heads, dim_head,
                                  q_sec, k_sec, v_sec, group,
                                  tq_cap=1024, tk_cap=1024,
                                  approx_recip=True):
    """Flash attention reading q/k/v straight from packed projection slabs.

    q_arr:  (B, Nq, ...) slab containing the q columns (section q_sec).
    kv_arr: (B, Nk, ...) slab containing the k / v columns (sections
            k_sec / v_sec).  For self-attention q_arr is kv_arr is the fused
            qkv slab.  Head(-group) selection happens purely in the BlockSpec
            index_maps: no XLA slices, no head split/merge transposes.
    Returns (B, Nq, heads*dim_head).
    """
    B, Nq, _ = q_arr.shape
    _, Nk, _ = kv_arr.shape
    H, D, g = heads, dim_head, group
    assert H % g == 0 and (g * D) % 128 == 0
    HG = H // g                      # number of head-groups
    BD = g * D                       # lane-dense block width along channels

    tq = _tile(Nq, tq_cap, 8)
    tk = _tile(Nk, tk_cap, 8)
    grid = (B, HG, Nq // tq, Nk // tk)

    qo, ko, vo = q_sec * HG, k_sec * HG, v_sec * HG
    exp_bf16 = (q_arr.dtype == jnp.bfloat16)
    kernel = functools.partial(_flash_attn_kernel, g=g, d=D, kv_axis=3,
                               exp_bf16=exp_bf16, approx_recip=approx_recip)

    return pl.pallas_call(
        kernel,
        out_shape=jax.ShapeDtypeStruct((B, Nq, H * D), q_arr.dtype),
        grid_spec=pltpu.PrefetchScalarGridSpec(
            num_scalar_prefetch=0,
            grid=grid,
            in_specs=[
                pl.BlockSpec((1, tq, BD), lambda b, hg, qi, kv: (b, qi, qo + hg)),
                pl.BlockSpec((1, tk, BD), lambda b, hg, qi, kv: (b, kv, ko + hg)),
                pl.BlockSpec((1, tk, BD), lambda b, hg, qi, kv: (b, kv, vo + hg)),
            ],
            out_specs=pl.BlockSpec((1, tq, BD),
                                   lambda b, hg, qi, kv: (b, qi, hg)),
            scratch_shapes=[
                pltpu.VMEM((g, tq, 1), jnp.float32),   # running max m
                pltpu.VMEM((g, tq, 1), jnp.float32),   # running denom l
                pltpu.VMEM((g, tq, D), jnp.float32),   # output accumulator
            ],
        ),
        compiler_params=pltpu.CompilerParams(
            dimension_semantics=("parallel", "parallel", "parallel",
                                 "arbitrary")),
    )(q_arr, kv_arr, kv_arr)


def pallas_flash_attention_split(qh, kh, vh, *, tq_cap=1024, tk_cap=1024,
                                 approx_recip=True):
    """Last-resort layout for head dims that cannot be packed to 128 lanes.

    qh/kh/vh: (B*H, N, D) with full-D blocks (always a legal BlockSpec).
    """
    BH, Nq, D = qh.shape
    _, Nk, _ = kh.shape
    tq = _tile(Nq, tq_cap, 8)
    tk = _tile(Nk, tk_cap, 8)
    grid = (BH, Nq // tq, Nk // tk)
    exp_bf16 = (qh.dtype == jnp.bfloat16)
    kernel = functools.partial(_flash_attn_kernel, g=1, d=D, kv_axis=2,
                               exp_bf16=exp_bf16, approx_recip=approx_recip)

    return pl.pallas_call(
        kernel,
        out_shape=jax.ShapeDtypeStruct((BH, Nq, D), qh.dtype),
        grid_spec=pltpu.PrefetchScalarGridSpec(
            num_scalar_prefetch=0,
            grid=grid,
            in_specs=[
                pl.BlockSpec((1, tq, D), lambda bh, qi, kv: (bh, qi, 0)),
                pl.BlockSpec((1, tk, D), lambda bh, qi, kv: (bh, kv, 0)),
                pl.BlockSpec((1, tk, D), lambda bh, qi, kv: (bh, kv, 0)),
            ],
            out_specs=pl.BlockSpec((1, tq, D), lambda bh, qi, kv: (bh, qi, 0)),
            scratch_shapes=[
                pltpu.VMEM((1, tq, 1), jnp.float32),
                pltpu.VMEM((1, tq, 1), jnp.float32),
                pltpu.VMEM((1, tq, D), jnp.float32),
            ],
        ),
        compiler_params=pltpu.CompilerParams(
            dimension_semantics=("parallel", "parallel", "arbitrary")),
    )(qh, kh, vh)


# ----------------------------------------------------------------------------
# CrossAttention module (parameters + forward)
# ----------------------------------------------------------------------------
class CrossAttention:
    def __init__(self, query_dim, context_dim=None, heads=8, dim_head=64,
                 dropout=0.0, dtype=jnp.float32, approx_reciprocal=True,
                 key=None):
        if key is None:
            key = jax.random.PRNGKey(0)
        inner_dim = dim_head * heads
        self.query_dim = query_dim
        self.context_dim = query_dim if context_dim is None else context_dim
        self.scale = dim_head ** (-0.5)
        self.heads = heads
        self.dim_head = dim_head
        self.dtype = dtype
        self.approx_reciprocal = approx_reciprocal

        k0, k1, k2, k3, k4 = jax.random.split(key, 5)

        def init_w(k, fan_in, fan_out):
            bound = 1.0 / math.sqrt(fan_in)
            # stored as [in, out] (pre-transposed vs. PyTorch's [out, in])
            return jax.random.uniform(k, (fan_in, fan_out), jnp.float32,
                                      -bound, bound)

        w_q = init_w(k0, query_dim, inner_dim)
        w_k = init_w(k1, self.context_dim, inner_dim)
        w_v = init_w(k2, self.context_dim, inner_dim)
        w_o = init_w(k3, inner_dim, query_dim)
        bound = 1.0 / math.sqrt(inner_dim)
        b_o = jax.random.uniform(k4, (query_dim,), jnp.float32, -bound, bound)

        # Raw (unscaled) weights, kept for the reference path / state dicts.
        self.w_q = w_q.astype(dtype)
        self.w_k = w_k.astype(dtype)
        self.w_v = w_v.astype(dtype)
        self.w_out = w_o.astype(dtype)
        self.b_out = b_o.astype(dtype)

        # Kernel weights: softmax scale folded into the q columns (in f32,
        # then cast) so the flash kernel never rescales q per kv step.
        w_q_scaled = w_q * self.scale
        self.w_q_scaled = w_q_scaled.astype(dtype)
        # Fused projections: one HBM pass over `context` for K and V, and a
        # single pass over `x` for Q/K/V in self-attention.
        self.w_kv = jnp.concatenate([w_k, w_v], axis=1).astype(dtype)
        self.w_qkv = (jnp.concatenate([w_q_scaled, w_k, w_v], axis=1
                                      ).astype(dtype)
                      if self.context_dim == query_dim else None)

        # Head-group size g such that g*dim_head is a multiple of 128
        # (lane-dense blocks).  g=1 for dim_head % 128 == 0, g=2 for the
        # common SD dim_head=64, etc.  None -> split-head fallback.
        g = 128 // math.gcd(dim_head, 128)
        self._group = g if heads % g == 0 else None
        # dropout == 0.0 -> identity at eval time.

    # -- split-head fallback (only for head dims that can't be lane-packed) --
    def _sdpa_split_fallback(self, q, k, v, B, Nq, Nk):
        # TODO(synk): unoptimized path (XLA head split/merge transposes,
        # 64-lane stores) — only reached when heads % (128/gcd(D,128)) != 0.
        h, d = self.heads, self.dim_head

        def split(t, n):
            return t.reshape(B, n, h, d).transpose(0, 2, 1, 3
                                                   ).reshape(B * h, n, d)

        oh = pallas_flash_attention_split(split(q, Nq), split(k, Nk),
                                          split(v, Nk),
                                          approx_recip=self.approx_reciprocal)
        return oh.reshape(B, h, Nq, d).transpose(0, 2, 1, 3
                                                 ).reshape(B, Nq, h * d)

    def __call__(self, x, context=None, mask=None):
        # TODO(synk): mask / additional_tokens / n_times_crossframe_attn_in_self
        # are not implemented (module defaults: None / 0).
        assert mask is None, "attention mask not implemented"
        B, Nq, _ = x.shape
        h, d = self.heads, self.dim_head
        inner = h * d
        x2 = x.reshape(B * Nq, -1)

        if context is None and self.w_qkv is not None:
            # Self-attention: single fused QKV matmul (one pass over x).  The
            # packed slab goes straight into the attention kernel; q/k/v are
            # selected via index_maps (sections 0 / 1 / 2).
            qkv = pallas_linear(x2, self.w_qkv).reshape(B, Nq, 3 * inner)
            if self._group is not None:
                out = pallas_flash_attention_packed(
                    qkv, qkv, heads=h, dim_head=d, q_sec=0, k_sec=1, v_sec=2,
                    group=self._group, approx_recip=self.approx_reciprocal)
            else:
                q = qkv[..., :inner]
                k = qkv[..., inner:2 * inner]
                v = qkv[..., 2 * inner:]
                out = self._sdpa_split_fallback(q, k, v, B, Nq, Nq)
        else:
            ctx = x if context is None else context
            Nk = ctx.shape[1]
            # q projection already carries the softmax scale.
            q = pallas_linear(x2, self.w_q_scaled).reshape(B, Nq, inner)
            kv = pallas_linear(ctx.reshape(B * Nk, -1), self.w_kv
                               ).reshape(B, Nk, 2 * inner)
            if self._group is not None:
                out = pallas_flash_attention_packed(
                    q, kv, heads=h, dim_head=d, q_sec=0, k_sec=0, v_sec=1,
                    group=self._group, approx_recip=self.approx_reciprocal)
            else:
                k = kv[..., :inner]
                v = kv[..., inner:]
                out = self._sdpa_split_fallback(q, k, v, B, Nq, Nk)

        out = pallas_linear(out.reshape(B * Nq, inner), self.w_out, self.b_out)
        return out.reshape(B, Nq, -1)


# ----------------------------------------------------------------------------
# Reference (plain JAX, f32) for sanity
# ----------------------------------------------------------------------------
def reference_forward(mod, x, context=None):
    f32 = jnp.float32
    xf = x.astype(f32)
    ctx = xf if context is None else context.astype(f32)
    B, Nq, _ = x.shape
    Nk = ctx.shape[1]
    h, d = mod.heads, mod.dim_head
    q = xf @ mod.w_q.astype(f32)
    k = ctx @ mod.w_k.astype(f32)
    v = ctx @ mod.w_v.astype(f32)

    def sh(t, n):
        return t.reshape(B, n, h, d).transpose(0, 2, 1, 3)

    qh, kh, vh = sh(q, Nq), sh(k, Nk), sh(v, Nk)
    s = jnp.einsum("bhid,bhjd->bhij", qh, kh) * mod.scale
    p = jax.nn.softmax(s, axis=-1)
    o = jnp.einsum("bhij,bhjd->bhid", p, vh)
    o = o.transpose(0, 2, 1, 3).reshape(B, Nq, h * d)
    return o @ mod.w_out.astype(f32) + mod.b_out.astype(f32)


if __name__ == "__main__":
    root = jax.random.PRNGKey(0)
    kx, kc, kp1, kp2, kp3, kp4 = jax.random.split(root, 6)

    B, Nq, Nk = 2, 16, 8
    query_dim, context_dim = 32, 24
    x = jax.random.normal(kx, (B, Nq, query_dim), jnp.float32)
    context = jax.random.normal(kc, (B, Nk, context_dim), jnp.float32)

    def check(name, out, ref, atol, rtol):
        out = jax.block_until_ready(out)
        assert out.shape == ref.shape, (name, out.shape, ref.shape)
        err = float(jnp.max(jnp.abs(out.astype(jnp.float32) - ref)))
        assert jnp.allclose(out.astype(jnp.float32), ref,
                            atol=atol, rtol=rtol), f"{name}: max abs err {err}"

    # 1) cross-attention, dim_head=128 -> packed path, g=1 (no slices/transposes)
    m1 = CrossAttention(query_dim, context_dim=context_dim, heads=2,
                        dim_head=128, key=kp1)
    check("cross_d128", m1(x, context), reference_forward(m1, x, context),
          3e-3, 3e-3)

    # 2) self-attention, fused QKV projection, dim_head=128
    m2 = CrossAttention(query_dim, heads=2, dim_head=128, key=kp2)
    check("self_d128", m2(x), reference_forward(m2, x), 3e-3, 3e-3)

    # 3) cross-attention, dim_head=64 -> head-group (g=2) packed path
    m3 = CrossAttention(query_dim, context_dim=context_dim, heads=2,
                        dim_head=64, key=kp3)
    check("cross_d64", m3(x, context), reference_forward(m3, x, context),
          3e-3, 3e-3)

    # 4) self-attention, fused QKV, dim_head=64 (g=2)
    m4 = CrossAttention(query_dim, heads=2, dim_head=64, key=kp4)
    check("self_d64", m4(x), reference_forward(m4, x), 3e-3, 3e-3)

    # 5) bf16 end-to-end: bf16 MXU inputs / weights, bf16 exp, f32 stats/acc
    m5 = CrossAttention(query_dim, context_dim=context_dim, heads=2,
                        dim_head=64, dtype=jnp.bfloat16, key=kp3)
    xb, cb = x.astype(jnp.bfloat16), context.astype(jnp.bfloat16)
    check("cross_d64_bf16", m5(xb, cb), reference_forward(m5, xb, cb),
          8e-2, 8e-2)

    print("KERNEL_OK")
</pallas_src>

<mosaic_0001>
module attributes {stable_mosaic.version = 11 : i64} {
  func.func @_linear_kernel(%arg0: i32, %arg1: i32, %arg2: memref<32x32xf32, #tpu.memory_space<vmem>>, %arg3: memref<32x256xf32, #tpu.memory_space<vmem>>, %arg4: memref<32x256xf32, #tpu.memory_space<vmem>>) attributes {dimension_semantics = [#tpu.dimension_semantics<parallel>, #tpu.dimension_semantics<parallel>], iteration_bounds = array<i64: 1, 1>, scalar_prefetch = 0 : i64, scratch_operands = 0 : i64, tpu.core_type = #tpu.core_type<tc>, window_params = [{transform_indices = @transform_0, window_bounds = array<i64: 32, 32>}, {transform_indices = @transform_1, window_bounds = array<i64: 32, 256>}, {transform_indices = @transform_2, window_bounds = array<i64: 32, 256>}]} {
    %c0 = arith.constant 0 : index
    %c0_0 = arith.constant 0 : index
    %0 = vector.load %arg2[%c0, %c0_0] : memref<32x32xf32, #tpu.memory_space<vmem>>, vector<32x32xf32>
    %c0_1 = arith.constant 0 : index
    %c0_2 = arith.constant 0 : index
    %1 = vector.load %arg3[%c0_1, %c0_2] : memref<32x256xf32, #tpu.memory_space<vmem>>, vector<32x256xf32>
    %cst = arith.constant dense<0.000000e+00> : vector<32x256xf32>
    %2 = tpu.matmul %0, %1, %cst {dimension_numbers = #tpu.dot_dimension_numbers<[1], [0], [0], [1], [0, 0, 1, 1], [], []>} : vector<32x32xf32>, vector<32x256xf32>, vector<32x256xf32> -> vector<32x256xf32>
    %c0_3 = arith.constant 0 : index
    %c0_4 = arith.constant 0 : index
    %3 = vector.load %arg4[%c0_3, %c0_4] : memref<32x256xf32, #tpu.memory_space<vmem>>, vector<32x256xf32>
    tpu.vector_store %arg4[%c0_3, %c0_4], %2 {strides = array<i32>} : memref<32x256xf32, #tpu.memory_space<vmem>>, vector<32x256xf32>,
    return
  }
  func.func @transform_0(%arg0: i32, %arg1: i32) -> (i32, i32) {
    %c0_i32 = arith.constant 0 : i32
    %c0_i32_0 = arith.constant 0 : i32
    return %arg0, %c0_i32 : i32, i32
  }
  func.func @transform_1(%arg0: i32, %arg1: i32) -> (i32, i32) {
    %c0_i32 = arith.constant 0 : i32
    %c0_i32_0 = arith.constant 0 : i32
    return %c0_i32, %arg1 : i32, i32
  }
  func.func @transform_2(%arg0: i32, %arg1: i32) -> (i32, i32) {
    %c0_i32 = arith.constant 0 : i32
    return %arg0, %arg1 : i32, i32
  }
}

</mosaic_0001>

<bundles_post_ra>
// kernel: tpu_custom_call.1
= control target key start
LH: loop header
LB: loop body
LE: loop exit
PB: predicated region body
PF: predicated region fallthrough
CT: control target
= control target key end

     0   :  { %7 = vsyncpa [#allocation3], 0  ;;  %s341_s0 = inlined_call_operand.hbm [shape: f32[32,32], index: 0, kind: input, shape index: {}]   ;;  %s342_s1 = inlined_call_operand.hbm [shape: f32[32,256], index: 1, kind: input, shape index: {}]   ;;  %s343_s2 = inlined_call_operand.hbm [shape: f32[32,256], index: 2, kind: output, shape index: {}]  }
   0x1   :  { %8 = vsyncpa [#allocation6], 0 }
   0x2   :  { %9 = vsyncpa [#allocation4], 0  ;;  %s276_s9 = smov [#allocation2]   ;;  %s204_s13 = scalar_lea.hbm %s341_s0, 512 }
   0x3   :  { %s15_s10 = sshll.u32 %s276_s9, 4  ;;  %p205_p0 = scmp.ne.s32.totalorder %s341_s0, %s204_s13  ;;  %s16_s10 = int_to_ptr.vmem [resolvable:$true] %s15_s10 }
   0x4   :  { %p208_p1 = scmp.lt.u32.totalorder %s204_s13, %s341_s0 }
   0x6   :  { %p210_p2 = pnand %p208_p1, %p205_p0 }
   0x8   :  { %213 = shalt.err (!%p210_p2)
}
   0x9   :  { %s214_s18 = scalar_lea.vmem %s16_s10, 512  ;;  %p219_p4 = scmp.lt.s32.totalorder %s16_s10, %s16_s10 }
   0xa   :  { %p215_p3 = scmp.ne.s32.totalorder %s16_s10, %s214_s18  ;;  %p220_p5 = scmp.lt.s32.totalorder %s214_s18, %s214_s18 }
   0xc   :  { %p221_p6 = por %p220_p5, %p219_p4 }
   0xe   :  { %p222_p7 = pnand %p221_p6, %p215_p3 }
  0x10   :  { %225 = shalt.err (!%p222_p7)
}
  0x11   :  { %s277_s19 = smov 128   ;;  %s278_s20 = smov 8  }
  0x12   :  { %21 = dma.hbm_to_vmem [thread:$0]  %s341_s0, 512, %s16_s10, [#allocation3], %s277_s19, %s277_s19, %s278_s20  }
  0x13   :  { %s279_s23 = smov [#allocation5]   ;;  %s226_s27 = scalar_lea.hbm %s342_s1, 1024 }
  0x14   :  { %s27_s24 = sshll.u32 %s279_s23, 4  ;;  %p227_p8 = scmp.ne.s32.totalorder %s342_s1, %s226_s27  ;;  %s28_s24 = int_to_ptr.vmem [resolvable:$true] %s27_s24 }
  0x15   :  { %p230_p9 = scmp.lt.u32.totalorder %s226_s27, %s342_s1 }
  0x17   :  { %p232_p10 = pnand %p230_p9, %p227_p8 }
  0x19   :  { %235 = shalt.err (!%p232_p10)
}
  0x1a   :  { %s236_s4 = scalar_lea.vmem %s28_s24, 1024  ;;  %p241_p12 = scmp.lt.s32.totalorder %s28_s24, %s28_s24 }
  0x1b   :  { %p237_p11 = scmp.ne.s32.totalorder %s28_s24, %s236_s4  ;;  %p242_p13 = scmp.lt.s32.totalorder %s236_s4, %s236_s4 }
  0x1d   :  { %p243_p0 = por %p242_p13, %p241_p12 }
  0x1f   :  { %p244_p1 = pnand %p243_p0, %p237_p11 }
  0x21   :  { %247 = shalt.err (!%p244_p1)
}
  0x22   :  { %s280_s0 = smov 256   ;;  %s281_s5 = smov 16  }
  0x23   :  { %33 = dma.hbm_to_vmem [thread:$0]  %s342_s1, 1024, %s28_s24, [#allocation6], %s280_s0, %s280_s0, %s281_s5  }
  0x24   :  { %270 = dma.done.wait [#allocation3], 512  }
  0x25   :  { %271 = vsyncadd [#allocation3], 4294966784 }
  0x26   :  { %272 = dma.done.wait [#allocation6], 1024  }
  0x27   :  { %273 = vsyncadd [#allocation6], 4294966272  ;;  %v282_v0 = vmov 0.0   ;;  %v45_v1 = vld [vmem:[#allocation5 + $0x8] sm:$0xff]  ;;  %v47_v2 = vld [vmem:[#allocation5 + $0x18] sm:$0xff]  ;;  %vm52_vm0 = vcmask 261120  }
  0x28   :  { %129 = vmatprep.mubr.f32.mxu0 %v282_v0  ;;  %141 = vmatprep.mubr.f32.mxu1 %v282_v0  ;;  %v44_v3 = vld [vmem:[#allocation5] sm:$0xff]  ;;  %v184_v4 = vpack.c.bf16 %v47_v2, %v45_v1  ;;  %v46_v5 = vld [vmem:[#allocation5 + $0x10] sm:$0xff]  ;;  %v49_v6 = vld [vmem:[#allocation5 + $0x28] sm:$0xff]  ;;  %s283_s1 = smov [#allocation7]  }
  0x29   :  { %v51_v7 = vld [vmem:[#allocation5 + $0x38] sm:$0xff]  ;;  %v186_v8 = vpack.c.bf16 %v46_v5, %v44_v3  ;;  %v48_v10 = vld [vmem:[#allocation5 + $0x20] sm:$0xff]  ;;  %v50_v11 = vld [vmem:[#allocation5 + $0x30] sm:$0xff]  ;;  %s167_s8 = sshll.u32 %s283_s1, 4  ;;  %s168_s8 = int_to_ptr.vmem [resolvable:$true] %s167_s8 }
  0x2a   :  { %v188_v9 = vpack.c.bf16 %v51_v7, %v49_v6  ;;  %185 = vmatprep.subr.bf16.mxu0 %v184_v4  ;;  %192 = vmatprep.subr.bf16.mxu1 %v184_v4  ;;  %v190_v12 = vpack.c.bf16 %v50_v11, %v48_v10  ;;  %v40_v13 = vld [vmem:[#allocation2] sm:$0xff]  ;;  %v42_v14 = vld [vmem:[#allocation2 + $0x10] sm:$0xff]  ;;  %v41_v15 = vld [vmem:[#allocation2 + $0x8] sm:$0xff]  ;;  %s248_s9 = scalar_lea.vmem %s168_s8, 1024  ;;  %p253_p3 = scmp.lt.s32.totalorder %s168_s8, %s168_s8 }
  0x2b   :  { %187 = vmatpush1.bf16.msra.mxu0 %v186_v8  ;;  %194 = vmatpush1.bf16.msra.mxu1 %v186_v8  ;;  %v43_v16 = vld [vmem:[#allocation2 + $0x18] sm:$0xff]  ;;  %p249_p2 = scmp.ne.s32.totalorder %s168_s8, %s248_s9  ;;  %p254_p4 = scmp.lt.s32.totalorder %s248_s9, %s248_s9 }
  0x2c   :  { %189 = vmatprep.subr.bf16.mxu0 %v188_v9  ;;  %193 = vmatprep.subr.bf16.mxu1 %v188_v9 }
  0x2d   :  { %p255_p5 = por %p254_p4, %p253_p3 }
  0x2f   :  { %191 = vmatpush1.bf16.msra.mxu0 %v190_v12  ;;  %195 = vmatpush1.bf16.msra.mxu1 %v190_v12  ;;  %p256_p6 = pnand %p255_p5, %p249_p2 }
  0x32   :  { %180 = vmatmul.mubr.msk.f32.vlgmr.msra.gmra.mrb[0].mxu0 %vm52_vm0, %v40_v13  ;;  %182 = vmatmul.mubr.msk.f32.vlgmr.msra.gmra.mrb[0].mxu1 %vm52_vm0, %v42_v14 }
  0x33   :  { %135 = vmatprep.mubr.f32.mxu0 %v282_v0  ;;  %147 = vmatprep.mubr.f32.mxu1 %v282_v0 }
  0x36   :  { %181 = vmatmul.mubr.msk.f32.gmra.mrb[2].mxu0 %vm52_vm0, %v41_v15  ;;  %183 = vmatmul.mubr.msk.f32.gmra.mrb[2].mxu1 %vm52_vm0, %v43_v16 }
 0x105   :  { %v131_v17 = vpop.f32.mrb[0].mxu0  ;;  %v143_v18 = vpop.f32.mrb[0].mxu1 }
 0x106   :  { %154 = vst [vmem:[#allocation7] sm:$0xff] %v131_v17  ;;  %158 = vst [vmem:[#allocation7 + $0x20] sm:$0xff] %v143_v18  ;;  %v133_v19 = vpop.f32.mrb[1].mxu0  ;;  %v145_v20 = vpop.f32.mrb[1].mxu1 }
 0x107   :  { %155 = vst [vmem:[#allocation7 + $0x8] sm:$0xff] %v133_v19  ;;  %159 = vst [vmem:[#allocation7 + $0x28] sm:$0xff] %v145_v20 }
 0x109   :  { %v137_v21 = vpop.f32.mrb[2].mxu0  ;;  %v149_v22 = vpop.f32.mrb[2].mxu1 }
 0x10a   :  { %156 = vst [vmem:[#allocation7 + $0x10] sm:$0xff] %v137_v21  ;;  %160 = vst [vmem:[#allocation7 + $0x30] sm:$0xff] %v149_v22  ;;  %v139_v23 = vpop.f32.mrb[3].mxu0  ;;  %v151_v24 = vpop.f32.mrb[3].mxu1 }
 0x10b   :  { %157 = vst [vmem:[#allocation7 + $0x18] sm:$0xff] %v139_v23  ;;  %161 = vst [vmem:[#allocation7 + $0x38] sm:$0xff] %v151_v24 }
 0x10c   :  { %259 = shalt.err (!%p256_p6)
}
 0x10d   :  { %s260_s12 = scalar_lea.hbm %s343_s2, 1024 }
 0x10e   :  { %p261_p7 = scmp.ne.s32.totalorder %s343_s2, %s260_s12  ;;  %p264_p8 = scmp.lt.u32.totalorder %s260_s12, %s343_s2 }
 0x110   :  { %p266_p9 = pnand %p264_p8, %p261_p7 }
 0x112   :  { %269 = shalt.err (!%p266_p9)
}
 0x113   :  { %173 = dma.vmem_to_hbm [thread:$0]  %s168_s8, 1024, %s343_s2, [#allocation4], %s280_s0, %s280_s0, %s281_s5  }
 0x114   :  { %274 = dma.done.wait [#allocation4], 1024  }
 0x115   :  { %275 = vsyncadd [#allocation4], 4294966272 }
 0x116   :  { %177 = vsyncpa [#allocation3], 1 }
 0x117   :  { %178 = vsyncpa [#allocation6], 1 }
 0x118   :  { %179 = vsyncpa [#allocation4], 1 }

</bundles_post_ra>
